<compile_context>
chip_gen: v5e
topology: v5e:2x2
jax: 0.10.0
libtpu: 0.0.40
codegen_flags: <defaults>
</compile_context>

<pallas_src>
import jax
import jax.numpy as jnp
from jax.experimental import pallas as pl
from jax.experimental.pallas import tpu as pltpu


def _round_up(x, m):
    return ((x + m - 1) // m) * m


def _physical_vmem_bytes():
    """Physical VMEM per TensorCore; conservative fallback (v7x) if unknown."""
    try:
        info = pltpu.get_tpu_info()
        cap = int(getattr(info, "vmem_capacity_bytes"))
        if cap > 0:
            return cap
    except Exception:
        pass
    return 64 << 20  # assume the tightest generation (v7x) if query fails


def _conv1x1_kernel(x_ref, w_ref, b_ref, o_ref):
    # x_ref: (Bt, C_in, TS)   w_ref: (C_out, C_in)   b_ref: (C_out, 1)
    # o_ref: (Bt, C_out, TS)  -- lane-dense along TS
    w = w_ref[...]
    bias = b_ref[...]
    for i in range(x_ref.shape[0]):          # static unroll over batch sub-block
        acc = jnp.dot(w, x_ref[i], preferred_element_type=jnp.float32)
        o_ref[i] = (acc + bias).astype(o_ref.dtype)


def feature_map_block(x_nchw, weight, bias, *, vmem_budget_bytes=None):
    """1x1 conv forward (FeatureMapBlock).

    x_nchw: (B, C_in, H, W)     float32
    weight: (C_out, C_in, 1, 1) float32  (PyTorch Conv2d layout)
    bias:   (C_out,)            float32
    returns (B, C_out, H, W)
    """
    B, C_in, H, W = x_nchw.shape
    C_out = weight.shape[0]
    S = H * W
    itemsize = jnp.dtype(x_nchw.dtype).itemsize

    # Free reshapes only: NCHW is already contiguous as (B, C_in, H*W).
    x3 = x_nchw.reshape(B, C_in, S)
    w_mat = weight.reshape(C_out, C_in)
    b_col = bias.reshape(C_out, 1)

    # ---- per-generation VMEM budget -------------------------------------
    phys_vmem = _physical_vmem_bytes()
    if vmem_budget_bytes is None:
        # ~3/8 of physical, capped at 48 MiB: 48 MiB on v5e/v6e, 24 MiB on v7x.
        vmem_budget_bytes = min(phys_vmem * 3 // 8, 48 << 20)

    # ---- honest VMEM accounting ------------------------------------------
    cin_p = _round_up(C_in, 8)       # sublane padding
    cout_p = _round_up(C_out, 8)
    # Resident weight + bias blocks (count double-buffered, lane-padded).
    wb_bytes = (2 * cout_p * _round_up(C_in, 128) * itemsize
                + 2 * cout_p * 128 * itemsize)
    # Double-buffered X-in + Y-out cost per (batch element x spatial column).
    per_col = 2 * (cin_p + cout_p) * itemsize

    avail = max(vmem_budget_bytes - wb_bytes, 128 * per_col)

    # ---- spatial tile: largest that fits, preferring a divisor of S ------
    cap_cols = max(128, int(avail // per_col))
    if S <= cap_cols:
        tile_s = S                                   # full-extent spatial block
    else:
        cap_cols = (cap_cols // 128) * 128
        tile_s = cap_cols
        # Prefer a multiple of 128 that divides S (keeps every store lane-dense
        # and avoids DMAing a thrown-away padded tail); don't shrink below half.
        t = cap_cols
        while t >= max(128, cap_cols // 2):
            if S % t == 0:
                tile_s = t
                break
            t -= 128

    # ---- batch sub-block: amortize per-step overhead on small maps --------
    Bt = 1
    if tile_s == S and B > 1:
        max_bt = max(1, int(avail // max(1, per_col * _round_up(tile_s, 128))))
        for cand in range(min(B, max_bt), 0, -1):
            if B % cand == 0:
                Bt = cand
                break

    # ---- explicit scoped-VMEM limit (totals + generous headroom) ----------
    tile_bytes = 2 * Bt * (cin_p + cout_p) * _round_up(tile_s, 128) * itemsize
    total_footprint = wb_bytes + tile_bytes
    vmem_limit = int(min(phys_vmem * 7 // 8,
                         max(total_footprint * 3 // 2 + (16 << 20), 32 << 20)))

    # ---- grid: put the axis with more blocks first (v7x core split) -------
    ns = pl.cdiv(S, tile_s)
    nb = pl.cdiv(B, Bt)
    if ns >= nb:
        grid = (ns, nb)
        xo_map = lambda si, bi: (bi, 0, si)
    else:
        grid = (nb, ns)
        xo_map = lambda bi, si: (bi, 0, si)
    wb_map = lambda i, j: (0, 0)                     # index-invariant, DMA'd once

    cost = pl.CostEstimate(
        flops=2 * B * S * C_in * C_out,
        transcendentals=0,
        bytes_accessed=itemsize * (B * C_in * S + C_out * C_in + C_out
                                   + B * C_out * S),
    )

    out = pl.pallas_call(
        _conv1x1_kernel,
        out_shape=jax.ShapeDtypeStruct((B, C_out, S), x_nchw.dtype),
        grid_spec=pltpu.PrefetchScalarGridSpec(
            num_scalar_prefetch=0,
            grid=grid,
            in_specs=[
                pl.BlockSpec((Bt, C_in, tile_s), xo_map),
                pl.BlockSpec((C_out, C_in), wb_map),
                pl.BlockSpec((C_out, 1), wb_map),
            ],
            out_specs=pl.BlockSpec((Bt, C_out, tile_s), xo_map),
        ),
        compiler_params=pltpu.CompilerParams(
            dimension_semantics=("parallel", "parallel"),
            vmem_limit_bytes=vmem_limit,
        ),
        cost_estimate=cost,
    )(x3, w_mat, b_col)

    # (B, C_out, H*W) -> (B, C_out, H, W): free reshape, already NCHW order.
    return out.reshape(B, C_out, H, W)


if __name__ == "__main__":
    B, C_in, H, W = 2, 4, 16, 16
    C_out = 8

    key = jax.random.PRNGKey(0)
    kx, kw, kb = jax.random.split(key, 3)

    x = jax.random.normal(kx, (B, C_in, H, W), dtype=jnp.float32)
    # Deterministic synthetic parameters with Conv2d(1x1) shapes.
    weight = jax.random.normal(kw, (C_out, C_in, 1, 1), dtype=jnp.float32) * 0.1
    bias = jax.random.normal(kb, (C_out,), dtype=jnp.float32) * 0.1

    y = feature_map_block(x, weight, bias)
    y = jax.block_until_ready(y)

    # Reference check in plain JAX (einsum over channel dim == 1x1 conv).
    ref = jnp.einsum("bchw,oc->bohw", x, weight.reshape(C_out, C_in)) \
        + bias[None, :, None, None]
    assert y.shape == (B, C_out, H, W)
    assert jnp.allclose(y, ref, atol=1e-5), "mismatch vs reference"

    print("KERNEL_OK")
</pallas_src>

<mosaic_0001>
module attributes {stable_mosaic.version = 11 : i64} {
  func.func @_conv1x1_kernel(%arg0: i32, %arg1: i32, %arg2: memref<2x4x256xf32, #tpu.memory_space<vmem>>, %arg3: memref<8x4xf32, #tpu.memory_space<vmem>>, %arg4: memref<8x1xf32, #tpu.memory_space<vmem>>, %arg5: memref<2x8x256xf32, #tpu.memory_space<vmem>>) attributes {dimension_semantics = [#tpu.dimension_semantics<parallel>, #tpu.dimension_semantics<parallel>], iteration_bounds = array<i64: 1, 1>, scalar_prefetch = 0 : i64, scratch_operands = 0 : i64, tpu.core_type = #tpu.core_type<tc>, window_params = [{transform_indices = @transform_0, window_bounds = array<i64: 2, 4, 256>}, {pipeline_mode = #tpu.pipeline_mode<synchronous>, transform_indices = @transform_1, window_bounds = array<i64: 8, 4>}, {pipeline_mode = #tpu.pipeline_mode<synchronous>, transform_indices = @transform_2, window_bounds = array<i64: 8, 1>}, {transform_indices = @transform_3, window_bounds = array<i64: 2, 8, 256>}]} {
    %c0 = arith.constant 0 : index
    %c0_0 = arith.constant 0 : index
    %0 = vector.load %arg3[%c0, %c0_0] : memref<8x4xf32, #tpu.memory_space<vmem>>, vector<8x4xf32>
    %c0_1 = arith.constant 0 : index
    %c0_2 = arith.constant 0 : index
    %1 = vector.load %arg4[%c0_1, %c0_2] : memref<8x1xf32, #tpu.memory_space<vmem>>, vector<8x1xf32>
    %c0_3 = arith.constant 0 : index
    %c0_4 = arith.constant 0 : index
    %c0_5 = arith.constant 0 : index
    %2 = vector.load %arg2[%c0_3, %c0_4, %c0_5] : memref<2x4x256xf32, #tpu.memory_space<vmem>>, vector<1x4x256xf32>
    %3 = vector.shape_cast %2 : vector<1x4x256xf32> to vector<4x256xf32>
    %cst = arith.constant dense<0.000000e+00> : vector<8x256xf32>
    %4 = tpu.matmul %0, %3, %cst {dimension_numbers = #tpu.dot_dimension_numbers<[1], [0], [0], [1], [0, 0, 1, 1], [], []>} : vector<8x4xf32>, vector<4x256xf32>, vector<8x256xf32> -> vector<8x256xf32>
    %5 = vector.broadcast %1 : vector<8x1xf32> to vector<8x256xf32>
    %6 = arith.addf %4, %5 : vector<8x256xf32>
    %c0_6 = arith.constant 0 : index
    %c0_7 = arith.constant 0 : index
    %c0_8 = arith.constant 0 : index
    %7 = vector.load %arg5[%c0_6, %c0_7, %c0_8] : memref<2x8x256xf32, #tpu.memory_space<vmem>>, vector<1x8x256xf32>
    %8 = vector.shape_cast %7 : vector<1x8x256xf32> to vector<8x256xf32>
    %9 = vector.shape_cast %6 : vector<8x256xf32> to vector<1x8x256xf32>
    tpu.vector_store %arg5[%c0_6, %c0_7, %c0_8], %9 {strides = array<i32>} : memref<2x8x256xf32, #tpu.memory_space<vmem>>, vector<1x8x256xf32>,
    %c1 = arith.constant 1 : index
    %c0_9 = arith.constant 0 : index
    %c0_10 = arith.constant 0 : index
    %10 = vector.load %arg2[%c1, %c0_9, %c0_10] : memref<2x4x256xf32, #tpu.memory_space<vmem>>, vector<1x4x256xf32>
    %11 = vector.shape_cast %10 : vector<1x4x256xf32> to vector<4x256xf32>
    %cst_11 = arith.constant dense<0.000000e+00> : vector<8x256xf32>
    %12 = tpu.matmul %0, %11, %cst_11 {dimension_numbers = #tpu.dot_dimension_numbers<[1], [0], [0], [1], [0, 0, 1, 1], [], []>} : vector<8x4xf32>, vector<4x256xf32>, vector<8x256xf32> -> vector<8x256xf32>
    %13 = vector.broadcast %1 : vector<8x1xf32> to vector<8x256xf32>
    %14 = arith.addf %12, %13 : vector<8x256xf32>
    %c1_12 = arith.constant 1 : index
    %c0_13 = arith.constant 0 : index
    %c0_14 = arith.constant 0 : index
    %15 = vector.load %arg5[%c1_12, %c0_13, %c0_14] : memref<2x8x256xf32, #tpu.memory_space<vmem>>, vector<1x8x256xf32>
    %16 = vector.shape_cast %15 : vector<1x8x256xf32> to vector<8x256xf32>
    %17 = vector.shape_cast %14 : vector<8x256xf32> to vector<1x8x256xf32>
    tpu.vector_store %arg5[%c1_12, %c0_13, %c0_14], %17 {strides = array<i32>} : memref<2x8x256xf32, #tpu.memory_space<vmem>>, vector<1x8x256xf32>,
    return
  }
  func.func @transform_0(%arg0: i32, %arg1: i32) -> (i32, i32, i32) {
    %c0_i32 = arith.constant 0 : i32
    %c0_i32_0 = arith.constant 0 : i32
    return %arg1, %c0_i32, %arg0 : i32, i32, i32
  }
  func.func @transform_1(%arg0: i32, %arg1: i32) -> (i32, i32) {
    %c0_i32 = arith.constant 0 : i32
    %c0_i32_0 = arith.constant 0 : i32
    %c0_i32_1 = arith.constant 0 : i32
    return %c0_i32, %c0_i32_0 : i32, i32
  }
  func.func @transform_2(%arg0: i32, %arg1: i32) -> (i32, i32) {
    %c0_i32 = arith.constant 0 : i32
    %c0_i32_0 = arith.constant 0 : i32
    %c0_i32_1 = arith.constant 0 : i32
    return %c0_i32, %c0_i32_0 : i32, i32
  }
  func.func @transform_3(%arg0: i32, %arg1: i32) -> (i32, i32, i32) {
    %c0_i32 = arith.constant 0 : i32
    %c0_i32_0 = arith.constant 0 : i32
    return %arg1, %c0_i32, %arg0 : i32, i32, i32
  }
}

</mosaic_0001>

<bundles_post_ra>
// kernel: tpu_custom_call.1
= control target key start
LH: loop header
LB: loop body
LE: loop exit
PB: predicated region body
PF: predicated region fallthrough
CT: control target
= control target key end

     0   :  { %v189_v1 = vmov 0   ;;  %s228_s0 = inlined_call_operand.vmem [shape: f32[2,4,256], index: 0, kind: input, shape index: {}]   ;;  %s229_s1 = inlined_call_operand.vmem [shape: f32[8,4], index: 1, kind: input, shape index: {}]   ;;  %s230_s2 = inlined_call_operand.vmem [shape: f32[8,1], index: 2, kind: input, shape index: {}]   ;;  %s231_s3 = inlined_call_operand.hbm [shape: f32[2,8,256], index: 3, kind: output, shape index: {}]  }
   0x1   :  { %v17_v0 = vld [vmem:[%s228_s0] sm:$0xff]  ;;  %162 = vset.pattern.permute.xlu0 %v189_v1 }
   0x2   :  { %24 = vst [vmem:[#allocation1] ss:$2 sm:$0xff] %v17_v0  ;;  %v16_v2 = vld [vmem:[%s230_s2] sm:$0xff] }
   0x3   :  { %8 = vsyncpa [#allocation3], 0  ;;  %20 = vperm.xlu0 %162, %v16_v2   ;;  %v153_v3 = vld [vmem:[%s228_s0 + $0x8] sm:$0xff]  ;;  %vm31_vm0 = vcmask 1043456   ;;  %v15_v6 = vld [vmem:[%s229_s1] sm:$0xff]  ;;  %vm27_vm1 = vcmask 31744  }
   0x4   :  { %s190_s0 = smov [#allocation2]   ;;  %s137_s21 = sshll.u32 %s231_s3, 4  ;;  %s138_s21 = int_to_ptr.hbm [resolvable:$true] %s137_s21 }
   0x5   :  { %s135_s1 = sshll.u32 %s190_s0, 4  ;;  %s191_s22 = smov 256   ;;  %s136_s1 = int_to_ptr.vmem [resolvable:$true] %s135_s1 }
   0x6   :  { %s192_s23 = smov 16  }
   0x9   :  { %v25_v4 = vld.sshfl [vmem:[#allocation1] sm:$0xff pattern:$0x75316420]  ;;  %v26_v5 = vld.sshfl [vmem:[#allocation1 + $0x8] sm:$0xff pattern:$0x75316420] }
   0xa   :  { %81 = vst [vmem:[#allocation1] ss:$2 sm:$0xff] %v153_v3  ;;  %149 = vmatpush.msk.msra.mxu0 %vm31_vm0, %v25_v4  ;;  %151 = vmatpush.msk.msra.mxu1 %vm31_vm0, %v26_v5 }
   0xb   :  { %150 = vmatmul.msk.f32.vlgmr.msra.gmra.mxu0 %vm27_vm1, %v15_v6  ;;  %152 = vmatmul.msk.f32.vlgmr.msra.gmra.mxu1 %vm27_vm1, %v15_v6 }
  0x11   :  { %v82_v7 = vld.sshfl [vmem:[#allocation1] sm:$0xff pattern:$0x75316420]  ;;  %v83_v8 = vld.sshfl [vmem:[#allocation1 + $0x8] sm:$0xff pattern:$0x75316420] }
  0x12   :  { %154 = vmatpush.msk.msra.mxu2 %vm31_vm0, %v82_v7  ;;  %156 = vmatpush.msk.msra.mxu3 %vm31_vm0, %v83_v8 }
  0x13   :  { %155 = vmatmul.msk.f32.vlgmr.msra.gmra.mxu2 %vm27_vm1, %v15_v6  ;;  %157 = vmatmul.msk.f32.vlgmr.msra.gmra.mxu3 %vm27_vm1, %v15_v6 }
  0x75   :  { %v21_v9 = vpop.permute.xlu0 %20 }
  0x88   :  { %v53_v10 = vpop.f32.mrf.mxu0  ;;  %v73_v11 = vpop.f32.mrf.mxu1 }
  0x89   :  { %v54_v12 = vadd.f32 %v53_v10, %v21_v9  ;;  %v74_v13 = vadd.f32 %v73_v11, %v21_v9 }
  0x8b   :  { %76 = vst [vmem:[#allocation2] sm:$0xff] %v54_v12 }
  0x8c   :  { %77 = vst [vmem:[#allocation2 + $0x8] sm:$0xff] %v74_v13 }
  0x96   :  { %v105_v14 = vpop.f32.mrf.mxu2  ;;  %v125_v15 = vpop.f32.mrf.mxu3 }
  0x97   :  { %v106_v16 = vadd.f32 %v105_v14, %v21_v9  ;;  %v126_v17 = vadd.f32 %v125_v15, %v21_v9 }
  0x99   :  { %129 = vst [vmem:[#allocation2 + $0x10] sm:$0xff] %v106_v16 }
  0x9a   :  { %130 = vst [vmem:[#allocation2 + $0x18] sm:$0xff] %v126_v17 }
  0x9b   :  { %143 = dma.vmem_to_hbm [thread:$0]  %s136_s1, 512, %s138_s21, [#allocation3], %s191_s22, %s191_s22, %s192_s23  }
  0x9c   :  { %187 = dma.done.wait [#allocation3], 512  }
  0x9d   :  { %188 = vsyncadd [#allocation3], 4294966784 }
  0x9e   :  { %148 = vsyncpa [#allocation3], 1 }

</bundles_post_ra>
